<compile_context>
chip_gen: v7x
topology: tpu7x:2x2x1
jax: 0.10.0
libtpu: 0.0.40
codegen_flags: <defaults>
</compile_context>

<pallas_src>
import functools

import jax
import jax.numpy as jnp
from jax.experimental import pallas as pl
from jax.experimental.pallas import tpu as pltpu

LANE = 128


def _round_up(n, m):
    return (n + m - 1) // m * m


def _mdn_kernel(x_ref, w1_ref, b1_ref, alpha_ref, w2_ref, b2_ref, out_ref,
                *, num_gaussians, gd):
    # ---- fc1 (MXU) + bias + PReLU (VPU); accumulate / elementwise in f32 ----
    h = jnp.dot(x_ref[...], w1_ref[...], preferred_element_type=jnp.float32)
    h = h + b1_ref[...]                       # (bm, H) + (1, H) broadcast
    alpha = alpha_ref[0]                      # scalar read from SMEM
    h = jnp.where(h >= 0.0, h, alpha * h)     # PReLU, single shared alpha

    # ---- fc2 (MXU) on the lane-padded weight layout (original column order) -
    o = jnp.dot(h.astype(w2_ref.dtype), w2_ref[...],
                preferred_element_type=jnp.float32)
    o = o + b2_ref[...]                       # (bm, W) with W % 128 == 0

    bm, W = o.shape
    lane = jax.lax.broadcasted_iota(jnp.int32, (bm, W), 1)
    is_pi = lane < num_gaussians              # pi lanes
    is_mu = lane < num_gaussians + gd         # pi+mu lanes (pi wins in select)

    # ---- pi head: masked softmax over the first G lanes ----
    logits = jnp.where(is_pi, o, -1e30)       # pad/mu/sigma lanes contribute 0
    m = jnp.max(logits, axis=1, keepdims=True)
    e = jnp.exp(logits - m)
    s = jnp.sum(e, axis=1, keepdims=True)
    r = pl.reciprocal(s, approx=True)         # EUP vrcp (free slot)
    r = r * (2.0 - s * r)                     # one Newton step -> f32 accuracy
    pi = e * r

    # ---- sigma head: exp (computed on all lanes, selected for sigma lanes) --
    sigma = jnp.exp(o)

    # Single full-tile, lane-dense (unmasked) store.
    out_ref[...] = jnp.where(is_pi, pi, jnp.where(is_mu, o, sigma))


def mdn_forward(x, w1, b1, alpha, w2, b2, *, num_gaussians, output_dim,
                bm=256, matmul_dtype=jnp.float32):
    """Pallas MDN forward.  Returns (pi, mu, sigma).

    bm:           batch tile (sweep 256-512 for large batches; clamped to B).
    matmul_dtype: jnp.bfloat16 recommended on v6e/v7x (halves streamed-input
                  HBM traffic); elementwise math always stays f32.
    """
    B, in_dim = x.shape
    hidden = w1.shape[1]
    G, D = num_gaussians, output_dim
    GD = G * D
    out_w = G * (2 * D + 1)
    assert w2.shape == (hidden, out_w)

    # --- lane-dense fc2 output: keep original column order, pad to 128 -------
    W = _round_up(out_w, LANE)
    f32 = jnp.float32

    w2p = jnp.zeros((hidden, W), matmul_dtype)
    w2p = w2p.at[:, :out_w].set(w2.astype(matmul_dtype))
    b2p = jnp.zeros((1, W), f32)
    b2p = b2p.at[:, :out_w].set(b2.astype(f32)[None, :])

    b1_2d = b1.astype(f32).reshape(1, hidden)
    alpha_1d = jnp.asarray(alpha, f32).reshape(1)
    w1c = w1.astype(matmul_dtype)
    xc = x.astype(matmul_dtype)

    # --- batch tiling: big tiles, zero-pad batch to a multiple of bm ---------
    bm = max(8, min(_round_up(bm, 8), _round_up(B, 8)))
    Bp = _round_up(B, bm)
    if Bp != B:
        xc = jnp.pad(xc, ((0, Bp - B), (0, 0)))

    kernel = functools.partial(_mdn_kernel, num_gaussians=G, gd=GD)

    out = pl.pallas_call(
        kernel,
        out_shape=jax.ShapeDtypeStruct((Bp, W), f32),
        grid_spec=pltpu.PrefetchScalarGridSpec(
            num_scalar_prefetch=0,
            grid=(Bp // bm,),
            in_specs=[
                pl.BlockSpec((bm, in_dim), lambda i: (i, 0)),       # x tile
                pl.BlockSpec((in_dim, hidden), lambda i: (0, 0)),   # W1 (resident)
                pl.BlockSpec((1, hidden), lambda i: (0, 0)),        # b1
                pl.BlockSpec(memory_space=pltpu.MemorySpace.SMEM),  # prelu alpha
                pl.BlockSpec((hidden, W), lambda i: (0, 0)),        # W2 (padded)
                pl.BlockSpec((1, W), lambda i: (0, 0)),             # b2 (padded)
            ],
            out_specs=pl.BlockSpec((bm, W), lambda i: (i, 0)),
        ),
        compiler_params=pltpu.CompilerParams(
            dimension_semantics=("parallel",)),      # megacore-shardable on v7x
    )(xc, w1c, b1_2d, alpha_1d, w2p, b2p)

    pi = out[:B, :G]
    mu = out[:B, G:G + GD].reshape(B, G, D)
    sigma = out[:B, G + GD:G + 2 * GD].reshape(B, G, D)
    return pi, mu, sigma


def mdn_reference(x, w1, b1, alpha, w2, b2, *, num_gaussians, output_dim):
    G, D = num_gaussians, output_dim
    h = x @ w1 + b1
    h = jnp.where(h >= 0, h, alpha * h)
    o = h @ w2 + b2
    pi = jax.nn.softmax(o[:, :G], axis=1)
    mu = o[:, G:G + G * D].reshape(-1, G, D)
    sigma = jnp.exp(o[:, G + G * D:]).reshape(-1, G, D)
    return pi, mu, sigma


if __name__ == "__main__":
    # Small shapes consistent with the module (fc1: in->22, fc2: 22->G*(2D+1)).
    batch = 50                    # deliberately not a multiple of 8 -> pad path
    input_dim = 16
    hidden = 22
    output_dim = 1
    num_gaussians = 30
    fc2_out = num_gaussians * (2 * output_dim + 1)   # 90

    key = jax.random.PRNGKey(0)
    kx, k1, k2, k3, k4 = jax.random.split(key, 5)

    x = jax.random.normal(kx, (batch, input_dim), dtype=jnp.float32)
    w1 = jax.random.normal(k1, (input_dim, hidden), dtype=jnp.float32) * 0.1
    b1 = jax.random.normal(k2, (hidden,), dtype=jnp.float32) * 0.05
    w2 = jax.random.normal(k3, (hidden, fc2_out), dtype=jnp.float32) * 0.1
    b2 = jax.random.normal(k4, (fc2_out,), dtype=jnp.float32) * 0.05
    alpha = jnp.float32(0.25)     # nn.PReLU() default init

    pi_r, mu_r, sigma_r = mdn_reference(
        x, w1, b1, alpha, w2, b2,
        num_gaussians=num_gaussians, output_dim=output_dim)

    # f32 matmul path: matches the JAX reference to tight tolerance.
    pi, mu, sigma = mdn_forward(
        x, w1, b1, alpha, w2, b2,
        num_gaussians=num_gaussians, output_dim=output_dim)
    jax.block_until_ready((pi, mu, sigma))

    assert pi.shape == (batch, num_gaussians)
    assert mu.shape == (batch, num_gaussians, output_dim)
    assert sigma.shape == (batch, num_gaussians, output_dim)
    assert jnp.allclose(pi, pi_r, atol=1e-5, rtol=1e-5)
    assert jnp.allclose(mu, mu_r, atol=1e-5, rtol=1e-5)
    assert jnp.allclose(sigma, sigma_r, atol=1e-5, rtol=1e-5)

    # bf16 matmul-input path (recommended on v6e/v7x); bm=16 forces a
    # multi-step grid + batch padding to exercise that code path too.
    pi_b, mu_b, sigma_b = mdn_forward(
        x, w1, b1, alpha, w2, b2,
        num_gaussians=num_gaussians, output_dim=output_dim,
        bm=16, matmul_dtype=jnp.bfloat16)
    jax.block_until_ready((pi_b, mu_b, sigma_b))
    assert jnp.allclose(pi_b, pi_r, atol=5e-2, rtol=1e-1)
    assert jnp.allclose(mu_b, mu_r, atol=5e-2, rtol=1e-1)
    assert jnp.allclose(sigma_b, sigma_r, atol=5e-2, rtol=1e-1)

    print("KERNEL_OK")
</pallas_src>

<mosaic_0001>
module attributes {stable_mosaic.version = 11 : i64} {
  func.func @_mdn_kernel(%arg0: i32, %arg1: memref<56x16xf32, #tpu.memory_space<vmem>>, %arg2: memref<16x22xf32, #tpu.memory_space<vmem>>, %arg3: memref<1x22xf32, #tpu.memory_space<vmem>>, %arg4: memref<1xf32, #tpu.memory_space<smem>>, %arg5: memref<22x128xf32, #tpu.memory_space<vmem>>, %arg6: memref<1x128xf32, #tpu.memory_space<vmem>>, %arg7: memref<56x128xf32, #tpu.memory_space<vmem>>) attributes {dimension_semantics = [#tpu.dimension_semantics<parallel>], iteration_bounds = array<i64: 1>, scalar_prefetch = 0 : i64, scratch_operands = 0 : i64, tpu.core_type = #tpu.core_type<tc>, window_params = [{transform_indices = @transform_0, window_bounds = array<i64: 56, 16>}, {pipeline_mode = #tpu.pipeline_mode<synchronous>, transform_indices = @transform_1, window_bounds = array<i64: 16, 22>}, {pipeline_mode = #tpu.pipeline_mode<synchronous>, transform_indices = @transform_2, window_bounds = array<i64: 1, 22>}, {transform_indices = @transform_3, window_bounds = array<i64: 1>}, {pipeline_mode = #tpu.pipeline_mode<synchronous>, transform_indices = @transform_4, window_bounds = array<i64: 22, 128>}, {pipeline_mode = #tpu.pipeline_mode<synchronous>, transform_indices = @transform_5, window_bounds = array<i64: 1, 128>}, {transform_indices = @transform_6, window_bounds = array<i64: 56, 128>}]} {
    %c0 = arith.constant 0 : index
    %c0_0 = arith.constant 0 : index
    %0 = vector.load %arg1[%c0, %c0_0] : memref<56x16xf32, #tpu.memory_space<vmem>>, vector<56x16xf32>
    %c0_1 = arith.constant 0 : index
    %c0_2 = arith.constant 0 : index
    %1 = vector.load %arg2[%c0_1, %c0_2] : memref<16x22xf32, #tpu.memory_space<vmem>>, vector<16x22xf32>
    %cst = arith.constant dense<0.000000e+00> : vector<56x22xf32>
    %2 = tpu.matmul %0, %1, %cst {dimension_numbers = #tpu.dot_dimension_numbers<[1], [0], [0], [1], [0, 0, 1, 1], [], []>} : vector<56x16xf32>, vector<16x22xf32>, vector<56x22xf32> -> vector<56x22xf32>
    %c0_3 = arith.constant 0 : index
    %c0_4 = arith.constant 0 : index
    %3 = vector.load %arg3[%c0_3, %c0_4] : memref<1x22xf32, #tpu.memory_space<vmem>>, vector<1x22xf32>
    %4 = vector.broadcast %3 : vector<1x22xf32> to vector<56x22xf32>
    %5 = arith.addf %2, %4 : vector<56x22xf32>
    %c0_5 = arith.constant 0 : index
    %6 = memref.load %arg4[%c0_5] : memref<1xf32, #tpu.memory_space<smem>>
    %cst_6 = arith.constant 0.000000e+00 : f32
    %7 = vector.broadcast %cst_6 : f32 to vector<56x22xf32>
    %8 = arith.cmpf oge, %5, %7 : vector<56x22xf32>
    %9 = vector.broadcast %6 : f32 to vector<56x22xf32>
    %10 = arith.mulf %9, %5 : vector<56x22xf32>
    %11 = arith.select %8, %5, %10 : vector<56x22xi1>, vector<56x22xf32>
    %c0_7 = arith.constant 0 : index
    %c0_8 = arith.constant 0 : index
    %12 = vector.load %arg5[%c0_7, %c0_8] : memref<22x128xf32, #tpu.memory_space<vmem>>, vector<22x128xf32>
    %cst_9 = arith.constant dense<0.000000e+00> : vector<56x128xf32>
    %13 = tpu.matmul %11, %12, %cst_9 {dimension_numbers = #tpu.dot_dimension_numbers<[1], [0], [0], [1], [0, 0, 1, 1], [], []>} : vector<56x22xf32>, vector<22x128xf32>, vector<56x128xf32> -> vector<56x128xf32>
    %c0_10 = arith.constant 0 : index
    %c0_11 = arith.constant 0 : index
    %14 = vector.load %arg6[%c0_10, %c0_11] : memref<1x128xf32, #tpu.memory_space<vmem>>, vector<1x128xf32>
    %15 = vector.broadcast %14 : vector<1x128xf32> to vector<56x128xf32>
    %16 = arith.addf %13, %15 : vector<56x128xf32>
    %17 = tpu.iota {dimensions = array<i32: 1>} : vector<56x128xi32>
    %c30_i32 = arith.constant 30 : i32
    %18 = vector.broadcast %c30_i32 : i32 to vector<56x128xi32>
    %19 = arith.cmpi slt, %17, %18 : vector<56x128xi32>
    %c60_i32 = arith.constant 60 : i32
    %20 = vector.broadcast %c60_i32 : i32 to vector<56x128xi32>
    %21 = arith.cmpi slt, %17, %20 : vector<56x128xi32>
    %cst_12 = arith.constant -1.000000e+30 : f32
    %22 = vector.broadcast %cst_12 : f32 to vector<56x128xf32>
    %23 = arith.select %19, %16, %22 : vector<56x128xi1>, vector<56x128xf32>
    %cst_13 = arith.constant dense<0xFF800000> : vector<56xf32>
    %24 = vector.multi_reduction <maximumf>, %23, %cst_13 [1] : vector<56x128xf32> to vector<56xf32>
    %25 = vector.shape_cast %24 : vector<56xf32> to vector<56x1xf32>
    %26 = vector.broadcast %25 : vector<56x1xf32> to vector<56x128xf32>
    %27 = arith.subf %23, %26 : vector<56x128xf32>
    %28 = math.exp %27 : vector<56x128xf32>
    %cst_14 = arith.constant dense<0.000000e+00> : vector<56xf32>
    %29 = vector.multi_reduction <add>, %28, %cst_14 [1] : vector<56x128xf32> to vector<56xf32>
    %30 = vector.shape_cast %29 : vector<56xf32> to vector<56x1xf32>
    %31 = tpu.reciprocal %30 {approx = true} : vector<56x1xf32> -> vector<56x1xf32>
    %32 = arith.mulf %30, %31 : vector<56x1xf32>
    %cst_15 = arith.constant 2.000000e+00 : f32
    %33 = vector.broadcast %cst_15 : f32 to vector<56x1xf32>
    %34 = arith.subf %33, %32 : vector<56x1xf32>
    %35 = arith.mulf %31, %34 : vector<56x1xf32>
    %36 = vector.broadcast %35 : vector<56x1xf32> to vector<56x128xf32>
    %37 = arith.mulf %28, %36 : vector<56x128xf32>
    %38 = math.exp %16 : vector<56x128xf32>
    %39 = arith.select %21, %16, %38 : vector<56x128xi1>, vector<56x128xf32>
    %40 = arith.select %19, %37, %39 : vector<56x128xi1>, vector<56x128xf32>
    %c0_16 = arith.constant 0 : index
    %c0_17 = arith.constant 0 : index
    %41 = vector.load %arg7[%c0_16, %c0_17] : memref<56x128xf32, #tpu.memory_space<vmem>>, vector<56x128xf32>
    tpu.vector_store %arg7[%c0_16, %c0_17], %40 {strides = array<i32>} : memref<56x128xf32, #tpu.memory_space<vmem>>, vector<56x128xf32>,
    return
  }
  func.func @transform_0(%arg0: i32) -> (i32, i32) {
    %c0_i32 = arith.constant 0 : i32
    %c0_i32_0 = arith.constant 0 : i32
    return %arg0, %c0_i32 : i32, i32
  }
  func.func @transform_1(%arg0: i32) -> (i32, i32) {
    %c0_i32 = arith.constant 0 : i32
    %c0_i32_0 = arith.constant 0 : i32
    %c0_i32_1 = arith.constant 0 : i32
    return %c0_i32, %c0_i32_0 : i32, i32
  }
  func.func @transform_2(%arg0: i32) -> (i32, i32) {
    %c0_i32 = arith.constant 0 : i32
    %c0_i32_0 = arith.constant 0 : i32
    %c0_i32_1 = arith.constant 0 : i32
    return %c0_i32, %c0_i32_0 : i32, i32
  }
  func.func @transform_3(%arg0: i32) -> i32 {
    %c0_i32 = arith.constant 0 : i32
    %c0_i32_0 = arith.constant 0 : i32
    return %c0_i32 : i32
  }
  func.func @transform_4(%arg0: i32) -> (i32, i32) {
    %c0_i32 = arith.constant 0 : i32
    %c0_i32_0 = arith.constant 0 : i32
    %c0_i32_1 = arith.constant 0 : i32
    return %c0_i32, %c0_i32_0 : i32, i32
  }
  func.func @transform_5(%arg0: i32) -> (i32, i32) {
    %c0_i32 = arith.constant 0 : i32
    %c0_i32_0 = arith.constant 0 : i32
    %c0_i32_1 = arith.constant 0 : i32
    return %c0_i32, %c0_i32_0 : i32, i32
  }
  func.func @transform_6(%arg0: i32) -> (i32, i32) {
    %c0_i32 = arith.constant 0 : i32
    %c0_i32_0 = arith.constant 0 : i32
    return %arg0, %c0_i32 : i32, i32
  }
}

</mosaic_0001>

<bundles_post_ra>
// kernel: tpu_custom_call.1
= control target key start
LH: loop header
LB: loop body
LE: loop exit
PB: predicated region body
PF: predicated region fallthrough
CT: control target
= control target key end

     0   :  { %v634_v2 = vmov 0.0|0.0   ;;  %vm635_vm0 = vmmov 0   ;;  %v636_v4 = vmov 0.0   ;;  %vm41_vm1 = vcmask 130048   ;;  %s846_s0 = inlined_call_operand.vmem [shape: f32[56,16], index: 0, kind: input, shape index: {}]   ;;  %s847_s1 = inlined_call_operand.vmem [shape: f32[16,22], index: 1, kind: input, shape index: {}]   ;;  %s848_s2 = inlined_call_operand.vmem [shape: f32[1,22], index: 2, kind: input, shape index: {}]   ;;  %s849_s3 = inlined_call_operand.<no memory space> [shape: f32[1], index: 3, kind: input, shape index: {}]   ;;  %s850_s4 = inlined_call_operand.vmem [shape: f32[22,128], index: 4, kind: input, shape index: {}]   ;;  %s851_s5 = inlined_call_operand.vmem [shape: f32[1,128], index: 5, kind: input, shape index: {}]   ;;  %s852_s6 = inlined_call_operand.hbm [shape: f32[56,128], index: 6, kind: output, shape index: {}]  }
   0x1   :  { %v32_v0 = vld [vmem:[%s847_s1] sm:$0xff]  ;;  %v33_v1 = vld [vmem:[%s847_s1 + $0x8] sm:$0xff]  ;;  %556 = vmatprep.subr.bf16.mxu0 %v634_v2  ;;  %508 = vmatprep.mubr.msk.f32.mxu0 %vm635_vm0, %v636_v4 }
   0x2   :  { %v557_v3 = vpack.c.bf16 %v33_v1, %v32_v0  ;;  %559 = vmatprep.subr.bf16.mxu1 %v634_v2  ;;  %535 = vmatprep.mubr.msk.f32.mxu1 %vm635_vm0, %v636_v4  ;;  %v25_v5 = vld [vmem:[%s846_s0] sm:$0xff] }
   0x4   :  { %558 = vmatpush3.bf16.msra.mxu0 %v557_v3 }
   0x5   :  { %12 = vsyncpa [#allocation4], 0  ;;  %v26_v6 = vld [vmem:[%s846_s0 + $0x8] sm:$0xff]  ;;  %v27_v7 = vld [vmem:[%s846_s0 + $0x10] sm:$0xff]  ;;  %vm218_vm2 = vcmask 1045504   ;;  %v171_v18 = vstv %s849_s3  ;;  %vm196_vm4 = vcmask 179200   ;;  %v322_v53 = vlaneseq }
   0x6   :  { %v28_v8 = vld [vmem:[%s846_s0 + $0x18] sm:$0xff]  ;;  %v29_v9 = vld [vmem:[%s846_s0 + $0x20] sm:$0xff]  ;;  %v30_v10 = vld [vmem:[%s846_s0 + $0x28] sm:$0xff] }
   0x7   :  { %509 = vmatmul.mubr.msk.f32.vlgmr.msra.gmra.mrb[0].mxu0 %vm41_vm1, %v25_v5  ;;  %v31_v11 = vld [vmem:[%s846_s0 + $0x30] sm:$0xff]  ;;  %v186_v12 = vld [vmem:[%s850_s4] sm:$0xff]  ;;  %v187_v13 = vld [vmem:[%s850_s4 + $0x8] sm:$0xff]  ;;  %v760_v54 = vand.u32 127, %v322_v53 }
   0x8   :  { %511 = vmatprep.mubr.msk.f32.mxu0 %vm635_vm0, %v636_v4  ;;  %v560_v14 = vpack.c.bf16 %v187_v13, %v186_v12  ;;  %v188_v15 = vld [vmem:[%s850_s4 + $0x10] sm:$0x3f]  ;;  %v468_v16 = vld [vmem:[%s848_s2] ss:$0 sm:$0xff]  ;;  %s637_s4 = smov [#allocation3]  }
   0x9   :  { %v476_v55 = vld [vmem:[%s851_s5] ss:$0 sm:$0xff]  ;;  %vm324_vm11 = vcmp.lt.s32.totalorder %v760_v54, 30  ;;  %vm325_vm12 = vcmp.lt.s32.totalorder %v760_v54, 60  ;;  %s457_s5 = sshll.u32 %s637_s4, 4  ;;  %s458_s5 = int_to_ptr.vmem [resolvable:$true] %s457_s5 }
   0xa   :  { %561 = vmatpush3.bf16.msra.mxu1 %v560_v14  ;;  %s610_s23 = scalar_lea.vmem %s458_s5, 896  ;;  %p615_p1 = scmp.lt.s32.totalorder %s458_s5, %s458_s5 }
   0xb   :  { %512 = vmatmul.mubr.msk.f32.gmra.mrb[2].mxu0 %vm41_vm1, %v26_v6  ;;  %533 = vmatprep.subr.mxu1 %v636_v4  ;;  %p611_p0 = scmp.ne.s32.totalorder %s458_s5, %s610_s23  ;;  %p616_p2 = scmp.lt.s32.totalorder %s610_s23, %s610_s23 }
   0xc   :  { %514 = vmatprep.mubr.msk.f32.mxu0 %vm635_vm0, %v636_v4 }
   0xd   :  { %p617_p3 = por %p616_p2, %p615_p1 }
   0xe   :  { %534 = vmatpush3.msk.msra.mxu1 %vm218_vm2, %v188_v15 }
   0xf   :  { %515 = vmatmul.mubr.msk.f32.gmra.mrb[4].mxu0 %vm41_vm1, %v27_v7  ;;  %p618_p4 = pnand %p617_p3, %p611_p0 }
  0x10   :  { %517 = vmatprep.mubr.msk.f32.mxu0 %vm635_vm0, %v636_v4 }
  0x13   :  { %518 = vmatmul.mubr.msk.f32.gmra.mrb[6].mxu0 %vm41_vm1, %v28_v8 }
  0x14   :  { %520 = vmatprep.mubr.msk.f32.mxu0 %vm635_vm0, %v636_v4 }
  0x17   :  { %521 = vmatmul.mubr.msk.f32.gmra.mrb[8].mxu0 %vm41_vm1, %v29_v9 }
  0x18   :  { %523 = vmatprep.mubr.msk.f32.mxu0 %vm635_vm0, %v636_v4 }
  0x1b   :  { %524 = vmatmul.mubr.msk.f32.gmra.mrb[10].mxu0 %vm41_vm1, %v30_v10 }
  0x1c   :  { %526 = vmatprep.mubr.msk.f32.mxu0 %vm635_vm0, %v636_v4 }
  0x1f   :  { %527 = vmatmul.mubr.msk.f32.gmra.mrb[12].mxu0 %vm41_vm1, %v31_v11 }
  0xda   :  { %v129_v17 = vpop.f32.mrb[0].mxu0 }
  0xdb   :  { %v130_v19 = vadd.f32 %v468_v16, %v129_v17  ;;  %v510_v20 = vpop.f32.mrb[1].mxu0 }
  0xdd   :  { %vm164_vm3 = vcmp.ge.f32.partialorder %v130_v19, 0.0  ;;  %v172_v21 = vmul.f32 %v171_v18, %v130_v19 }
  0xde   :  { %v134_v22 = vpop.f32.mrb[2].mxu0 }
  0xdf   :  { %v135_v23 = vadd.f32 %v468_v16, %v134_v22  ;;  %v513_v24 = vpop.f32.mrb[3].mxu0  ;;  %v179_v25 = vsel %vm164_vm3, %v130_v19, %v172_v21 }
  0xe0   :  { %536 = vmatmul.mubr.msk.f32.vlgmr.msra.gmra.mrb[0].mxu1 %vm196_vm4, %v179_v25 }
  0xe1   :  { %vm165_vm5 = vcmp.ge.f32.partialorder %v135_v23, 0.0  ;;  %v173_v26 = vmul.f32 %v171_v18, %v135_v23  ;;  %538 = vmatprep.mubr.msk.f32.mxu1 %vm635_vm0, %v636_v4 }
  0xe2   :  { %v139_v27 = vpop.f32.mrb[4].mxu0 }
  0xe3   :  { %v140_v28 = vadd.f32 %v468_v16, %v139_v27  ;;  %v516_v29 = vpop.f32.mrb[5].mxu0  ;;  %v180_v30 = vsel %vm165_vm5, %v135_v23, %v173_v26 }
  0xe4   :  { %539 = vmatmul.mubr.msk.f32.gmra.mrb[2].mxu1 %vm196_vm4, %v180_v30 }
  0xe5   :  { %vm166_vm6 = vcmp.ge.f32.partialorder %v140_v28, 0.0  ;;  %v174_v31 = vmul.f32 %v171_v18, %v140_v28  ;;  %541 = vmatprep.mubr.msk.f32.mxu1 %vm635_vm0, %v636_v4 }
  0xe6   :  { %v144_v32 = vpop.f32.mrb[6].mxu0 }
  0xe7   :  { %v145_v33 = vadd.f32 %v468_v16, %v144_v32  ;;  %v519_v34 = vpop.f32.mrb[7].mxu0  ;;  %v181_v35 = vsel %vm166_vm6, %v140_v28, %v174_v31 }
  0xe8   :  { %542 = vmatmul.mubr.msk.f32.gmra.mrb[4].mxu1 %vm196_vm4, %v181_v35 }
  0xe9   :  { %vm167_vm7 = vcmp.ge.f32.partialorder %v145_v33, 0.0  ;;  %v175_v36 = vmul.f32 %v171_v18, %v145_v33  ;;  %544 = vmatprep.mubr.msk.f32.mxu1 %vm635_vm0, %v636_v4 }
  0xea   :  { %v149_v37 = vpop.f32.mrb[8].mxu0 }
  0xeb   :  { %v150_v38 = vadd.f32 %v468_v16, %v149_v37  ;;  %v522_v39 = vpop.f32.mrb[9].mxu0  ;;  %v182_v40 = vsel %vm167_vm7, %v145_v33, %v175_v36 }
  0xec   :  { %545 = vmatmul.mubr.msk.f32.gmra.mrb[6].mxu1 %vm196_vm4, %v182_v40 }
  0xed   :  { %vm168_vm8 = vcmp.ge.f32.partialorder %v150_v38, 0.0  ;;  %v176_v41 = vmul.f32 %v171_v18, %v150_v38  ;;  %547 = vmatprep.mubr.msk.f32.mxu1 %vm635_vm0, %v636_v4 }
  0xee   :  { %v154_v42 = vpop.f32.mrb[10].mxu0 }
  0xef   :  { %v155_v43 = vadd.f32 %v468_v16, %v154_v42  ;;  %v525_v44 = vpop.f32.mrb[11].mxu0  ;;  %v183_v45 = vsel %vm168_vm8, %v150_v38, %v176_v41 }
  0xf0   :  { %548 = vmatmul.mubr.msk.f32.gmra.mrb[8].mxu1 %vm196_vm4, %v183_v45 }
  0xf1   :  { %vm169_vm9 = vcmp.ge.f32.partialorder %v155_v43, 0.0  ;;  %v177_v46 = vmul.f32 %v171_v18, %v155_v43  ;;  %550 = vmatprep.mubr.msk.f32.mxu1 %vm635_vm0, %v636_v4 }
  0xf2   :  { %v159_v47 = vpop.f32.mrb[12].mxu0 }
  0xf3   :  { %v160_v48 = vadd.f32 %v468_v16, %v159_v47  ;;  %v528_v49 = vpop.f32.mrb[13].mxu0  ;;  %v184_v50 = vsel %vm169_vm9, %v155_v43, %v177_v46 }
  0xf4   :  { %551 = vmatmul.mubr.msk.f32.gmra.mrb[10].mxu1 %vm196_vm4, %v184_v50 }
  0xf5   :  { %vm170_vm10 = vcmp.ge.f32.partialorder %v160_v48, 0.0  ;;  %v178_v51 = vmul.f32 %v171_v18, %v160_v48  ;;  %553 = vmatprep.mubr.msk.f32.mxu1 %vm635_vm0, %v636_v4 }
  0xf7   :  { %v185_v52 = vsel %vm170_vm10, %v160_v48, %v178_v51 }
  0xf8   :  { %554 = vmatmul.mubr.msk.f32.gmra.mrb[12].mxu1 %vm196_vm4, %v185_v52 }
 0x1b3   :  { %v288_v56 = vpop.f32.mrb[0].mxu1 }
 0x1b4   :  { %v289_v57 = vadd.f32 %v476_v55, %v288_v56  ;;  %v537_v58 = vpop.f32.mrb[1].mxu1 }
 0x1b6   :  { %v417_v59 = vmul.f32 1.442695, %v289_v57  ;;  %v326_v60 = vsel %vm324_vm11, %v289_v57, -1e+30 }
 0x1b7   :  { %333 = vmax.xlane.f32.xlu0 %v326_v60  ;;  %v293_v61 = vpop.f32.mrb[2].mxu1 }
 0x1b8   :  { %568 = vpow2.f32 %v417_v59  ;;  %v294_v62 = vadd.f32 %v476_v55, %v293_v61  ;;  %v540_v63 = vpop.f32.mrb[3].mxu1 }
 0x1ba   :  { %v419_v0 = vmul.f32 1.442695, %v294_v62  ;;  %v327_v1 = vsel %vm324_vm11, %v294_v62, -1e+30 }
 0x1bb   :  { %335 = vmax.xlane.f32.xlu0 %v327_v1  ;;  %v298_v2 = vpop.f32.mrb[4].mxu1 }
 0x1bc   :  { %570 = vpow2.f32 %v419_v0  ;;  %v299_v3 = vadd.f32 %v476_v55, %v298_v2  ;;  %v543_v4 = vpop.f32.mrb[5].mxu1 }
 0x1be   :  { %v421_v5 = vmul.f32 1.442695, %v299_v3  ;;  %v328_v6 = vsel %vm324_vm11, %v299_v3, -1e+30 }
 0x1bf   :  { %337 = vmax.xlane.f32.xlu1 %v328_v6  ;;  %v303_v7 = vpop.f32.mrb[6].mxu1 }
 0x1c0   :  { %572 = vpow2.f32 %v421_v5  ;;  %v304_v8 = vadd.f32 %v476_v55, %v303_v7  ;;  %v546_v9 = vpop.f32.mrb[7].mxu1 }
 0x1c2   :  { %v569_v10 = vpop.eup %568  ;;  %v423_v11 = vmul.f32 1.442695, %v304_v8  ;;  %v329_v12 = vsel %vm324_vm11, %v304_v8, -1e+30 }
 0x1c3   :  { %v777_v13 = vsel %vm325_vm12, %v289_v57, %v569_v10  ;;  %339 = vmax.xlane.f32.xlu1 %v329_v12  ;;  %v308_v14 = vpop.f32.mrb[8].mxu1 }
 0x1c4   :  { %574 = vpow2.f32 %v423_v11  ;;  %v309_v15 = vadd.f32 %v476_v55, %v308_v14  ;;  %v549_v16 = vpop.f32.mrb[9].mxu1 }
 0x1c6   :  { %v571_v17 = vpop.eup %570  ;;  %v425_v18 = vmul.f32 1.442695, %v309_v15  ;;  %v330_v19 = vsel %vm324_vm11, %v309_v15, -1e+30 }
 0x1c7   :  { %v783_v20 = vsel %vm325_vm12, %v294_v62, %v571_v17  ;;  %341 = vmax.xlane.f32.xlu0 %v330_v19  ;;  %v313_v21 = vpop.f32.mrb[10].mxu1 }
 0x1c8   :  { %576 = vpow2.f32 %v425_v18  ;;  %v314_v22 = vadd.f32 %v476_v55, %v313_v21  ;;  %v552_v23 = vpop.f32.mrb[11].mxu1 }
 0x1ca   :  { %v573_v24 = vpop.eup %572  ;;  %v427_v25 = vmul.f32 1.442695, %v314_v22  ;;  %v331_v26 = vsel %vm324_vm11, %v314_v22, -1e+30 }
 0x1cb   :  { %v789_v27 = vsel %vm325_vm12, %v299_v3, %v573_v24  ;;  %343 = vmax.xlane.f32.xlu1 %v331_v26  ;;  %v318_v28 = vpop.f32.mrb[12].mxu1 }
 0x1cc   :  { %578 = vpow2.f32 %v427_v25  ;;  %v319_v29 = vadd.f32 %v476_v55, %v318_v28  ;;  %v555_v30 = vpop.f32.mrb[13].mxu1 }
 0x1ce   :  { %v575_v31 = vpop.eup %574  ;;  %v429_v32 = vmul.f32 1.442695, %v319_v29  ;;  %v332_v33 = vsel %vm324_vm11, %v319_v29, -1e+30 }
 0x1cf   :  { %v795_v34 = vsel %vm325_vm12, %v304_v8, %v575_v31  ;;  %345 = vmax.xlane.f32.xlu0 %v332_v33 }
 0x1d0   :  { %580 = vpow2.f32 %v429_v32 }
 0x1d2   :  { %v577_v35 = vpop.eup %576 }
 0x1d3   :  { %v799_v36 = vsel %vm325_vm12, %v309_v15, %v577_v35 }
 0x1d6   :  { %v579_v37 = vpop.eup %578 }
 0x1d7   :  { %v803_v38 = vsel %vm325_vm12, %v314_v22, %v579_v37 }
 0x1da   :  { %v581_v39 = vpop.eup %580 }
 0x1db   :  { %v807_v40 = vsel %vm325_vm12, %v319_v29, %v581_v39 }
 0x244   :  { %v334_v41 = vpop.xlane.xlu0 %333 }
 0x245   :  { %v347_v42 = vsub.f32 %v326_v60, %v334_v41 }
 0x247   :  { %v354_v43 = vmul.f32 1.442695, %v347_v42 }
 0x248   :  { %v336_v44 = vpop.xlane.xlu0 %335 }
 0x249   :  { %582 = vpow2.f32 %v354_v43  ;;  %v348_v45 = vsub.f32 %v327_v1, %v336_v44 }
 0x24b   :  { %v356_v46 = vmul.f32 1.442695, %v348_v45 }
 0x24c   :  { %v338_v47 = vpop.xlane.xlu1 %337 }
 0x24d   :  { %584 = vpow2.f32 %v356_v46  ;;  %v349_v48 = vsub.f32 %v328_v6, %v338_v47 }
 0x24f   :  { %v358_v49 = vmul.f32 1.442695, %v349_v48 }
 0x250   :  { %v340_v50 = vpop.xlane.xlu1 %339 }
 0x251   :  { %586 = vpow2.f32 %v358_v49  ;;  %v350_v51 = vsub.f32 %v329_v12, %v340_v50 }
 0x253   :  { %v583_v52 = vpop.eup %582  ;;  %v360_v53 = vmul.f32 1.442695, %v350_v51 }
 0x254   :  { %v342_v55 = vpop.xlane.xlu0 %341  ;;  %368 = vadd.xlane.f32.xlu1 %v583_v52 }
 0x255   :  { %588 = vpow2.f32 %v360_v53  ;;  %v351_v56 = vsub.f32 %v330_v19, %v342_v55 }
 0x257   :  { %v585_v57 = vpop.eup %584  ;;  %v362_v58 = vmul.f32 1.442695, %v351_v56 }
 0x258   :  { %v344_v59 = vpop.xlane.xlu1 %343  ;;  %370 = vadd.xlane.f32.xlu0 %v585_v57 }
 0x259   :  { %590 = vpow2.f32 %v362_v58  ;;  %v352_v60 = vsub.f32 %v331_v26, %v344_v59 }
 0x25b   :  { %v587_v61 = vpop.eup %586  ;;  %v364_v62 = vmul.f32 1.442695, %v352_v60 }
 0x25c   :  { %372 = vadd.xlane.f32.xlu1 %v587_v61  ;;  %v346_v63 = vpop.xlane.xlu0 %345 }
 0x25d   :  { %592 = vpow2.f32 %v364_v62  ;;  %v353_v0 = vsub.f32 %v332_v33, %v346_v63 }
 0x25f   :  { %v589_v1 = vpop.eup %588  ;;  %v366_v2 = vmul.f32 1.442695, %v353_v0 }
 0x260   :  { %374 = vadd.xlane.f32.xlu0 %v589_v1 }
 0x261   :  { %594 = vpow2.f32 %v366_v2 }
 0x263   :  { %v591_v3 = vpop.eup %590 }
 0x264   :  { %376 = vadd.xlane.f32.xlu1 %v591_v3 }
 0x267   :  { %v593_v4 = vpop.eup %592 }
 0x268   :  { %378 = vadd.xlane.f32.xlu0 %v593_v4 }
 0x26b   :  { %v809_v5 = vpop.eup %594 }
 0x26c   :  { %380 = vadd.xlane.f32.xlu1 %v809_v5 }
 0x2e1   :  { %v369_v6 = vpop.xlane.xlu1 %368 }
 0x2e2   :  { %596 = vrcp.f32 %v369_v6 }
 0x2e5   :  { %v371_v7 = vpop.xlane.xlu0 %370 }
 0x2e6   :  { %598 = vrcp.f32 %v371_v7 }
 0x2e9   :  { %v373_v8 = vpop.xlane.xlu1 %372 }
 0x2ea   :  { %600 = vrcp.f32 %v373_v8 }
 0x2ec   :  { %v597_v9 = vpop.eup %596 }
 0x2ed   :  { %v389_v10 = vmul.f32 %v597_v9, %v369_v6  ;;  %v375_v11 = vpop.xlane.xlu0 %374 }
 0x2ee   :  { %602 = vrcp.f32 %v375_v11 }
 0x2ef   :  { %v396_v12 = vsub.f32 2.0, %v389_v10 }
 0x2f0   :  { %v599_v14 = vpop.eup %598 }
 0x2f1   :  { %v403_v15 = vmul.f32 %v597_v9, %v396_v12  ;;  %v390_v16 = vmul.f32 %v599_v14, %v371_v7  ;;  %v377_v17 = vpop.xlane.xlu1 %376 }
 0x2f2   :  { %604 = vrcp.f32 %v377_v17 }
 0x2f3   :  { %v410_v18 = vmul.f32 %v583_v52, %v403_v15  ;;  %v397_v19 = vsub.f32 2.0, %v390_v16 }
 0x2f4   :  { %v601_v21 = vpop.eup %600 }
 0x2f5   :  { %v438_v22 = vsel %vm324_vm11, %v410_v18, %v777_v13  ;;  %v404_v23 = vmul.f32 %v599_v14, %v397_v19  ;;  %v391_v24 = vmul.f32 %v601_v21, %v373_v8  ;;  %v379_v25 = vpop.xlane.xlu0 %378 }
 0x2f6   :  { %445 = vst [vmem:[#allocation3] sm:$0xff] %v438_v22  ;;  %606 = vrcp.f32 %v379_v25 }
 0x2f7   :  { %v411_v26 = vmul.f32 %v585_v57, %v404_v23  ;;  %v398_v28 = vsub.f32 2.0, %v391_v24 }
 0x2f8   :  { %v603_v29 = vpop.eup %602 }
 0x2f9   :  { %v439_v30 = vsel %vm324_vm11, %v411_v26, %v783_v20  ;;  %v405_v31 = vmul.f32 %v601_v21, %v398_v28  ;;  %v392_v32 = vmul.f32 %v603_v29, %v375_v11  ;;  %v381_v33 = vpop.xlane.xlu1 %380 }
 0x2fa   :  { %446 = vst [vmem:[#allocation3 + $0x8] sm:$0xff] %v439_v30  ;;  %608 = vrcp.f32 %v381_v33 }
 0x2fb   :  { %v412_v35 = vmul.f32 %v587_v61, %v405_v31  ;;  %v399_v37 = vsub.f32 2.0, %v392_v32 }
 0x2fc   :  { %v605_v13 = vpop.eup %604 }
 0x2fd   :  { %v440_v39 = vsel %vm324_vm11, %v412_v35, %v789_v27  ;;  %v406_v41 = vmul.f32 %v603_v29, %v399_v37  ;;  %v393_v42 = vmul.f32 %v605_v13, %v377_v17 }
 0x2fe   :  { %447 = vst [vmem:[#allocation3 + $0x10] sm:$0xff] %v440_v39 }
 0x2ff   :  { %v413_v43 = vmul.f32 %v589_v1, %v406_v41  ;;  %v400_v44 = vsub.f32 2.0, %v393_v42 }
 0x300   :  { %v607_v45 = vpop.eup %606 }
 0x301   :  { %v441_v20 = vsel %vm324_vm11, %v413_v43, %v795_v34  ;;  %v407_v46 = vmul.f32 %v605_v13, %v400_v44  ;;  %v394_v47 = vmul.f32 %v607_v45, %v379_v25 }
 0x302   :  { %448 = vst [vmem:[#allocation3 + $0x18] sm:$0xff] %v441_v20 }
 0x303   :  { %v414_v48 = vmul.f32 %v591_v3, %v407_v46  ;;  %v401_v49 = vsub.f32 2.0, %v394_v47 }
 0x304   :  { %v609_v50 = vpop.eup %608 }
 0x305   :  { %v442_v27 = vsel %vm324_vm11, %v414_v48, %v799_v36  ;;  %v408_v51 = vmul.f32 %v607_v45, %v401_v49  ;;  %v395_v52 = vmul.f32 %v609_v50, %v381_v33 }
 0x306   :  { %449 = vst [vmem:[#allocation3 + $0x20] sm:$0xff] %v442_v27 }
 0x307   :  { %v415_v53 = vmul.f32 %v593_v4, %v408_v51  ;;  %v402_v55 = vsub.f32 2.0, %v395_v52 }
 0x309   :  { %v443_v34 = vsel %vm324_vm11, %v415_v53, %v803_v38  ;;  %v409_v56 = vmul.f32 %v609_v50, %v402_v55 }
 0x30a   :  { %450 = vst [vmem:[#allocation3 + $0x28] sm:$0xff] %v443_v34 }
 0x30b   :  { %v416_v57 = vmul.f32 %v809_v5, %v409_v56 }
 0x30d   :  { %v444_v36 = vsel %vm324_vm11, %v416_v57, %v807_v40 }
 0x30e   :  { %451 = vst [vmem:[#allocation3 + $0x30] sm:$0xff] %v444_v36 }
 0x30f   :  { %621 = shalt.err (!%p618_p4)
}
 0x310   :  { %s622_s26 = scalar_lea.hbm %s852_s6, 896 }
 0x311   :  { %p623_p5 = scmp.ne.s32.totalorder %s852_s6, %s622_s26  ;;  %p626_p6 = scmp.lt.u32.totalorder %s622_s26, %s852_s6 }
 0x313   :  { %p628_p7 = pnand %p626_p6, %p623_p5 }
 0x315   :  { %631 = shalt.err (!%p628_p7)
}
 0x316   :  { %s638_s30 = smov 128   ;;  %s639_s7 = smov 8  }
 0x317   :  { %463 = dma.vmem_to_hbm [thread:$0]  %s458_s5, 896, %s852_s6, [#allocation4], %s638_s30, %s638_s30, %s639_s7  }
 0x318   :  { %632 = dma.done.wait [#allocation4], 896  }
 0x319   :  { %633 = vsyncadd [#allocation4], 4294966400 }
 0x31a   :  { %467 = vsyncpa [#allocation4], 1 }

</bundles_post_ra>
